<compile_context>
chip_gen: v6e
topology: v6e:2x2x1
jax: 0.10.0
libtpu: 0.0.40
codegen_flags: <defaults>
</compile_context>

<pallas_src>
import functools

import jax
import jax.numpy as jnp
from jax.experimental import pallas as pl
from jax.experimental.pallas import tpu as pltpu

_EPS = 1e-12  # added to squared norms, matching torch's cosine_embedding_loss


def _defloss_kernel(score_ref, x1_ref, x2_ref, out_ref, abs_acc, cos_acc,
                    *, w1, w2, n_score_elems, n_batch):
    i = pl.program_id(0)

    @pl.when(i == 0)
    def _():
        abs_acc[...] = jnp.zeros_like(abs_acc)
        cos_acc[...] = jnp.zeros_like(cos_acc)

    score = score_ref[...]                                   # (tb, S)
    x1 = x1_ref[...]                                         # (tb, D)
    x2 = x2_ref[...]                                         # (tb, D)

    # ---- L1 loss against an all-zero label: accumulate sum(|score|) ----
    abs_acc[...] += jnp.sum(jnp.abs(score), keepdims=True)   # (1, 1)

    # ---- cosine_embedding_loss with target = -1, margin = 0:
    #      per row: max(0, cos(x1, x2)); accumulate the sum over rows ----
    prod = jnp.sum(x1 * x2, axis=-1, keepdims=True)          # (tb, 1)
    m1 = jnp.sum(x1 * x1, axis=-1, keepdims=True) + _EPS
    m2 = jnp.sum(x2 * x2, axis=-1, keepdims=True) + _EPS
    cos = prod * jax.lax.rsqrt(m1 * m2)                      # (tb, 1)
    cos_acc[...] += jnp.sum(jnp.maximum(cos, 0.0), keepdims=True)

    # ---- finalize: means + weighted combination, single (1,1) store ----
    @pl.when(i == pl.num_programs(0) - 1)
    def _():
        loss1 = abs_acc[...] * (1.0 / n_score_elems)
        loss2 = cos_acc[...] * (1.0 / n_batch)
        out_ref[...] = (w1 * loss1 + w2 * loss2).astype(out_ref.dtype)


def defloss_forward(score, input1, input2, *, w1=1.0, w2=1.0, tile_b=8):
    """Pallas TPU implementation of DefLoss.forward; returns a scalar f32."""
    assert score.ndim == 2 and input1.ndim == 2 and input2.ndim == 2
    B, D = input1.shape
    assert input2.shape == (B, D)
    assert score.shape[0] == B
    S = score.shape[1]

    tile_b = min(tile_b, B)
    assert B % tile_b == 0, "batch must be divisible by the batch tile"
    grid = (B // tile_b,)

    kernel = functools.partial(
        _defloss_kernel, w1=float(w1), w2=float(w2),
        n_score_elems=float(score.size), n_batch=float(B))

    out = pl.pallas_call(
        kernel,
        out_shape=jax.ShapeDtypeStruct((1, 1), jnp.float32),
        grid=grid,
        in_specs=[
            pl.BlockSpec((tile_b, S), lambda i: (i, 0)),
            pl.BlockSpec((tile_b, D), lambda i: (i, 0)),
            pl.BlockSpec((tile_b, D), lambda i: (i, 0)),
        ],
        out_specs=pl.BlockSpec((1, 1), lambda i: (0, 0)),
        scratch_shapes=[pltpu.VMEM((1, 1), jnp.float32),
                        pltpu.VMEM((1, 1), jnp.float32)],
        compiler_params=pltpu.CompilerParams(
            dimension_semantics=("arbitrary",)),   # reduction over batch tiles
    )(score, input1, input2)
    return out[0, 0]


if __name__ == "__main__":
    batch = 8          # sublane-aligned small batch
    feat = 128         # feature dim -> lane axis
    w1, w2 = 1.0, 1.0

    k0, k1, k2 = jax.random.split(jax.random.PRNGKey(0), 3)
    score = jax.random.normal(k0, (batch, 1), jnp.float32)
    input1 = jax.random.normal(k1, (batch, feat), jnp.float32)
    input2 = jax.random.normal(k2, (batch, feat), jnp.float32)

    loss = defloss_forward(score, input1, input2, w1=w1, w2=w2)
    loss = jax.block_until_ready(loss)

    # ---- pure-JAX reference of the torch forward (correctness check) ----
    ref_loss1 = jnp.mean(jnp.abs(score))                     # l1_loss vs zeros
    prod = jnp.sum(input1 * input2, axis=1)
    m1 = jnp.sum(input1 * input1, axis=1) + _EPS
    m2 = jnp.sum(input2 * input2, axis=1) + _EPS
    cos = prod / jnp.sqrt(m1 * m2)
    ref_loss2 = jnp.mean(jnp.maximum(cos, 0.0))              # target=-1, margin=0
    ref = w1 * ref_loss1 + w2 * ref_loss2

    err = float(jnp.abs(loss - ref))
    assert loss.shape == (), loss.shape
    assert err < 1e-4, f"mismatch, abs err = {err}"
    print("KERNEL_OK")
</pallas_src>

<mosaic_0001>
module attributes {stable_mosaic.version = 11 : i64} {
  func.func @_defloss_kernel(%arg0: i32, %arg1: memref<8x1xf32, #tpu.memory_space<vmem>>, %arg2: memref<8x128xf32, #tpu.memory_space<vmem>>, %arg3: memref<8x128xf32, #tpu.memory_space<vmem>>, %arg4: memref<1x1xf32, #tpu.memory_space<vmem>>, %arg5: memref<1x1xf32, #tpu.memory_space<vmem>>, %arg6: memref<1x1xf32, #tpu.memory_space<vmem>>) attributes {dimension_semantics = [#tpu.dimension_semantics<arbitrary>], iteration_bounds = array<i64: 1>, scalar_prefetch = 0 : i64, scratch_operands = 2 : i64, tpu.core_type = #tpu.core_type<tc>, window_params = [{transform_indices = @transform_0, window_bounds = array<i64: 8, 1>}, {transform_indices = @transform_1, window_bounds = array<i64: 8, 128>}, {transform_indices = @transform_2, window_bounds = array<i64: 8, 128>}, {pipeline_mode = #tpu.pipeline_mode<synchronous>, transform_indices = @transform_3, window_bounds = array<i64: 1, 1>}]} {
    %c0_i32 = arith.constant 0 : i32
    %0 = arith.cmpi eq, %arg0, %c0_i32 : i32
    %1 = arith.extui %0 : i1 to i32
    %c0_i32_0 = arith.constant 0 : i32
    %2 = arith.cmpi ne, %1, %c0_i32_0 : i32
    scf.if %2 {
      %cst_23 = arith.constant 0.000000e+00 : f32
      %44 = vector.broadcast %cst_23 : f32 to vector<1x1xf32>
      %c0_24 = arith.constant 0 : index
      %c0_25 = arith.constant 0 : index
      %45 = vector.load %arg5[%c0_24, %c0_25] : memref<1x1xf32, #tpu.memory_space<vmem>>, vector<1x1xf32>
      tpu.vector_store %arg5[%c0_24, %c0_25], %44 {strides = array<i32>} : memref<1x1xf32, #tpu.memory_space<vmem>>, vector<1x1xf32>,
      %cst_26 = arith.constant 0.000000e+00 : f32
      %46 = vector.broadcast %cst_26 : f32 to vector<1x1xf32>
      %c0_27 = arith.constant 0 : index
      %c0_28 = arith.constant 0 : index
      %47 = vector.load %arg6[%c0_27, %c0_28] : memref<1x1xf32, #tpu.memory_space<vmem>>, vector<1x1xf32>
      tpu.vector_store %arg6[%c0_27, %c0_28], %46 {strides = array<i32>} : memref<1x1xf32, #tpu.memory_space<vmem>>, vector<1x1xf32>,
    } else {
    }
    %c0 = arith.constant 0 : index
    %c0_1 = arith.constant 0 : index
    %3 = vector.load %arg1[%c0, %c0_1] : memref<8x1xf32, #tpu.memory_space<vmem>>, vector<8x1xf32>
    %c0_2 = arith.constant 0 : index
    %c0_3 = arith.constant 0 : index
    %4 = vector.load %arg2[%c0_2, %c0_3] : memref<8x128xf32, #tpu.memory_space<vmem>>, vector<8x128xf32>
    %c0_4 = arith.constant 0 : index
    %c0_5 = arith.constant 0 : index
    %5 = vector.load %arg3[%c0_4, %c0_5] : memref<8x128xf32, #tpu.memory_space<vmem>>, vector<8x128xf32>
    %c0_6 = arith.constant 0 : index
    %c0_7 = arith.constant 0 : index
    %6 = vector.load %arg5[%c0_6, %c0_7] : memref<1x1xf32, #tpu.memory_space<vmem>>, vector<1x1xf32>
    %7 = math.absf %3 : vector<8x1xf32>
    %8 = vector.shape_cast %7 : vector<8x1xf32> to vector<1x8x1xf32>
    %cst = arith.constant dense<0.000000e+00> : vector<1xf32>
    %9 = vector.multi_reduction <add>, %8, %cst [1, 2] : vector<1x8x1xf32> to vector<1xf32>
    %10 = vector.shape_cast %9 : vector<1xf32> to vector<1x1x1xf32>
    %11 = vector.extract %10[0, 0, 0] : f32 from vector<1x1x1xf32>
    %12 = vector.broadcast %11 : f32 to vector<1x1xf32>
    %13 = arith.addf %6, %12 : vector<1x1xf32>
    %c0_8 = arith.constant 0 : index
    %c0_9 = arith.constant 0 : index
    %14 = vector.load %arg5[%c0_8, %c0_9] : memref<1x1xf32, #tpu.memory_space<vmem>>, vector<1x1xf32>
    tpu.vector_store %arg5[%c0_8, %c0_9], %13 {strides = array<i32>} : memref<1x1xf32, #tpu.memory_space<vmem>>, vector<1x1xf32>,
    %15 = arith.mulf %4, %5 : vector<8x128xf32>
    %cst_10 = arith.constant dense<0.000000e+00> : vector<8xf32>
    %16 = vector.multi_reduction <add>, %15, %cst_10 [1] : vector<8x128xf32> to vector<8xf32>
    %17 = vector.shape_cast %16 : vector<8xf32> to vector<8x1xf32>
    %18 = arith.mulf %4, %4 : vector<8x128xf32>
    %cst_11 = arith.constant dense<0.000000e+00> : vector<8xf32>
    %19 = vector.multi_reduction <add>, %18, %cst_11 [1] : vector<8x128xf32> to vector<8xf32>
    %20 = vector.shape_cast %19 : vector<8xf32> to vector<8x1xf32>
    %cst_12 = arith.constant 9.99999996E-13 : f32
    %21 = vector.broadcast %cst_12 : f32 to vector<8x1xf32>
    %22 = arith.addf %20, %21 : vector<8x1xf32>
    %23 = arith.mulf %5, %5 : vector<8x128xf32>
    %cst_13 = arith.constant dense<0.000000e+00> : vector<8xf32>
    %24 = vector.multi_reduction <add>, %23, %cst_13 [1] : vector<8x128xf32> to vector<8xf32>
    %25 = vector.shape_cast %24 : vector<8xf32> to vector<8x1xf32>
    %cst_14 = arith.constant 9.99999996E-13 : f32
    %26 = vector.broadcast %cst_14 : f32 to vector<8x1xf32>
    %27 = arith.addf %25, %26 : vector<8x1xf32>
    %28 = arith.mulf %22, %27 : vector<8x1xf32>
    %29 = math.rsqrt %28 : vector<8x1xf32>
    %30 = arith.mulf %17, %29 : vector<8x1xf32>
    %c0_15 = arith.constant 0 : index
    %c0_16 = arith.constant 0 : index
    %31 = vector.load %arg6[%c0_15, %c0_16] : memref<1x1xf32, #tpu.memory_space<vmem>>, vector<1x1xf32>
    %cst_17 = arith.constant 0.000000e+00 : f32
    %32 = vector.broadcast %cst_17 : f32 to vector<8x1xf32>
    %33 = arith.maximumf %30, %32 : vector<8x1xf32>
    %34 = vector.shape_cast %33 : vector<8x1xf32> to vector<1x8x1xf32>
    %cst_18 = arith.constant dense<0.000000e+00> : vector<1xf32>
    %35 = vector.multi_reduction <add>, %34, %cst_18 [1, 2] : vector<1x8x1xf32> to vector<1xf32>
    %36 = vector.shape_cast %35 : vector<1xf32> to vector<1x1x1xf32>
    %37 = vector.extract %36[0, 0, 0] : f32 from vector<1x1x1xf32>
    %38 = vector.broadcast %37 : f32 to vector<1x1xf32>
    %39 = arith.addf %31, %38 : vector<1x1xf32>
    %c0_19 = arith.constant 0 : index
    %c0_20 = arith.constant 0 : index
    %40 = vector.load %arg6[%c0_19, %c0_20] : memref<1x1xf32, #tpu.memory_space<vmem>>, vector<1x1xf32>
    tpu.vector_store %arg6[%c0_19, %c0_20], %39 {strides = array<i32>} : memref<1x1xf32, #tpu.memory_space<vmem>>, vector<1x1xf32>,
    %c0_i32_21 = arith.constant 0 : i32
    %41 = arith.cmpi eq, %arg0, %c0_i32_21 : i32
    %42 = arith.extui %41 : i1 to i32
    %c0_i32_22 = arith.constant 0 : i32
    %43 = arith.cmpi ne, %42, %c0_i32_22 : i32
    scf.if %43 {
      %c0_23 = arith.constant 0 : index
      %c0_24 = arith.constant 0 : index
      %44 = vector.load %arg5[%c0_23, %c0_24] : memref<1x1xf32, #tpu.memory_space<vmem>>, vector<1x1xf32>
      %cst_25 = arith.constant 1.250000e-01 : f32
      %45 = vector.broadcast %cst_25 : f32 to vector<1x1xf32>
      %46 = arith.mulf %44, %45 : vector<1x1xf32>
      %c0_26 = arith.constant 0 : index
      %c0_27 = arith.constant 0 : index
      %47 = vector.load %arg6[%c0_26, %c0_27] : memref<1x1xf32, #tpu.memory_space<vmem>>, vector<1x1xf32>
      %cst_28 = arith.constant 1.250000e-01 : f32
      %48 = vector.broadcast %cst_28 : f32 to vector<1x1xf32>
      %49 = arith.mulf %47, %48 : vector<1x1xf32>
      %cst_29 = arith.constant 1.000000e+00 : f32
      %50 = vector.broadcast %cst_29 : f32 to vector<1x1xf32>
      %51 = arith.mulf %50, %46 : vector<1x1xf32>
      %cst_30 = arith.constant 1.000000e+00 : f32
      %52 = vector.broadcast %cst_30 : f32 to vector<1x1xf32>
      %53 = arith.mulf %52, %49 : vector<1x1xf32>
      %54 = arith.addf %51, %53 : vector<1x1xf32>
      %c0_31 = arith.constant 0 : index
      %c0_32 = arith.constant 0 : index
      %55 = vector.load %arg4[%c0_31, %c0_32] : memref<1x1xf32, #tpu.memory_space<vmem>>, vector<1x1xf32>
      tpu.vector_store %arg4[%c0_31, %c0_32], %54 {strides = array<i32>} : memref<1x1xf32, #tpu.memory_space<vmem>>, vector<1x1xf32>,
    } else {
    }
    return
  }
  func.func @transform_0(%arg0: i32) -> (i32, i32) {
    %c0_i32 = arith.constant 0 : i32
    %c0_i32_0 = arith.constant 0 : i32
    return %arg0, %c0_i32 : i32, i32
  }
  func.func @transform_1(%arg0: i32) -> (i32, i32) {
    %c0_i32 = arith.constant 0 : i32
    %c0_i32_0 = arith.constant 0 : i32
    return %arg0, %c0_i32 : i32, i32
  }
  func.func @transform_2(%arg0: i32) -> (i32, i32) {
    %c0_i32 = arith.constant 0 : i32
    %c0_i32_0 = arith.constant 0 : i32
    return %arg0, %c0_i32 : i32, i32
  }
  func.func @transform_3(%arg0: i32) -> (i32, i32) {
    %c0_i32 = arith.constant 0 : i32
    %c0_i32_0 = arith.constant 0 : i32
    %c0_i32_1 = arith.constant 0 : i32
    return %c0_i32, %c0_i32_0 : i32, i32
  }
}

</mosaic_0001>

<bundles_post_ra>
// kernel: tpu_custom_call.1
= control target key start
LH: loop header
LB: loop body
LE: loop exit
PB: predicated region body
PF: predicated region fallthrough
CT: control target
= control target key end

     0   :  { %8 = vsyncpa [#allocation5], 0  ;;  %s200_s0 = inlined_call_operand.vmem [shape: f32[8,1], index: 0, kind: input, shape index: {}]   ;;  %s201_s1 = inlined_call_operand.vmem [shape: f32[8,128], index: 1, kind: input, shape index: {}]   ;;  %s202_s2 = inlined_call_operand.hbm [shape: f32[8,128], index: 2, kind: input, shape index: {}]   ;;  %s203_s3 = inlined_call_operand.hbm [shape: f32[1,1], index: 3, kind: output, shape index: {}]  }
   0x1   :  { %9 = vsyncpa [#allocation6], 0  ;;  %s160_s12 = smov [#allocation4]  }
   0x2   :  { %s20_s13 = sshll.u32 %s160_s12, 4  ;;  %s21_s13 = int_to_ptr.vmem [resolvable:$true] %s20_s13 }
   0x3   :  { %s124_s14 = scalar_lea.vmem %s21_s13, 128  ;;  %p129_p1 = scmp.lt.s32.totalorder %s21_s13, %s21_s13 }
   0x4   :  { %p125_p0 = scmp.ne.s32.totalorder %s21_s13, %s124_s14  ;;  %p130_p2 = scmp.lt.s32.totalorder %s124_s14, %s124_s14 }
   0x6   :  { %p131_p3 = por %p130_p2, %p129_p1 }
   0x8   :  { %p132_p4 = pnand %p131_p3, %p125_p0 }
   0xa   :  { %135 = shalt.err (!%p132_p4)
}
   0xb   :  { %23 = dma.hbm_to_vmem [thread:$0]  %s202_s2, 128, %s21_s13, [#allocation5]  }
   0xc   :  { %156 = dma.done.wait [#allocation5], 128  }
   0xd   :  { %157 = vsyncadd [#allocation5], 4294967168  ;;  %v35_v0 = vld [vmem:[%s201_s1] sm:$0xff]  ;;  %vm39_vm0 = vcmask 7168   ;;  %vm31_vm1 = vcmask 0   ;;  %v161_v25 = vmov 0.0  }
   0xe   :  { %v36_v1 = vld [vmem:[#allocation4] sm:$0xff]  ;;  %v57_v2 = vmul.f32 %v35_v0, %v35_v0  ;;  %32 = vst.msk [vmem:[#allocation2] sm:$0x1] %vm31_vm1, %v161_v25  ;;  %33 = vst.msk [vmem:[#allocation3] sm:$0x1] %vm31_vm1, %v161_v25  ;;  %s162_s2 = smov [#allocation7]  }
   0xf   :  { %v54_v3 = vmul.f32 %v36_v1, %v35_v0  ;;  %v61_v4 = vmul.f32 %v36_v1, %v36_v1  ;;  %v34_v5 = vld [vmem:[%s200_s0] sm:$0xff]  ;;  %s98_s21 = sshll.u32 %s162_s2, 4  ;;  %s99_s21 = int_to_ptr.vmem [resolvable:$true] %s98_s21 }
  0x10   :  { %58 = vadd.xlane.f32.xlu0 %v57_v2  ;;  %v38_v6 = vand.u32 2147483647, %v34_v5  ;;  %s136_s22 = scalar_lea.vmem %s99_s21, 16  ;;  %s140_s23 = scalar_lea.vmem %s99_s21, 32 }
  0x11   :  { %55 = vadd.xlane.f32.xlu1 %v54_v3  ;;  %p137_p5 = scmp.ne.s32.totalorder %s99_s21, %s136_s22  ;;  %p141_p6 = scmp.lt.s32.totalorder %s99_s21, %s99_s21 }
  0x12   :  { %v40_v7 = vsel %vm39_vm0, %v38_v6, 0.0  ;;  %p142_p7 = scmp.lt.s32.totalorder %s140_s23, %s136_s22 }
  0x14   :  { %62 = vadd.xlane.f32.xlu0 %v61_v4  ;;  %p143_p8 = por %p142_p7, %p141_p6 }
  0x15   :  { %41 = vadd.xlane.f32.xlu1 %v40_v7  ;;  %v37_v26 = vld [vmem:[#allocation2] sm:$0x1]  ;;  %v68_v36 = vld [vmem:[#allocation3] sm:$0x1] }
  0x16   :  { %p144_p9 = pnand %p143_p8, %p137_p5 }
  0x99   :  { %v59_v8 = vpop.xlane.xlu0 %58 }
  0x9a   :  { %v60_v10 = vadd.f32 1e-12, %v59_v8  ;;  %v56_v13 = vpop.xlane.xlu1 %55 }
  0x9d   :  { %v63_v9 = vpop.xlane.xlu0 %62 }
  0x9e   :  { %v64_v11 = vadd.f32 1e-12, %v63_v9  ;;  %v42_v18 = vpop.xlane.xlu1 %41 }
  0x9f   :  { %v43_v19 = vrot.slane %v42_v18, 4 }
  0xa0   :  { %v65_v12 = vmul.f32 %v64_v11, %v60_v10 }
  0xa1   :  { %v44_v20 = vadd.f32 %v43_v19, %v42_v18 }
  0xa2   :  { %114 = vrsqrt.f32 %v65_v12 }
  0xa3   :  { %v45_v21 = vrot.slane %v44_v20, 2 }
  0xa5   :  { %v46_v22 = vadd.f32 %v45_v21, %v44_v20 }
  0xa7   :  { %v47_v23 = vrot.slane %v46_v22, 1 }
  0xa9   :  { %v48_v24 = vadd.f32 %v47_v23, %v46_v22 }
  0xab   :  { %107 = vpush %v48_v24 }
  0xaf   :  { %v115_v14 = vpop.eup %114 }
  0xb0   :  { %v67_v15 = vmul.f32 %v115_v14, %v56_v13 }
  0xb2   :  { %v69_v16 = vmax.f32 %v67_v15, 0.0 }
  0xb4   :  { %v70_v17 = vsel %vm39_vm0, %v69_v16, 0.0 }
  0xb5   :  { %71 = vadd.xlane.f32.xlu0 %v70_v17 }
  0xdc   :  { %s108_s0 = spop %107 }
  0xdd   :  { %v50_v27 = vstv %s108_s0 }
  0xde   :  { %v51_v28 = vadd.f32 %v50_v27, %v37_v26 }
  0xe0   :  { %53 = vst.msk [vmem:[#allocation2] sm:$0x1] %vm31_vm1, %v51_v28 }
  0xe7   :  { %v86_v39 = vld [vmem:[#allocation2] sm:$0x1] }
  0xe8   :  { %v87_v41 = vmul.f32 0.125, %v86_v39 }
 0x13e   :  { %v72_v29 = vpop.xlane.xlu0 %71 }
 0x13f   :  { %v73_v30 = vrot.slane %v72_v29, 4 }
 0x141   :  { %v74_v31 = vadd.f32 %v73_v30, %v72_v29 }
 0x143   :  { %v75_v32 = vrot.slane %v74_v31, 2 }
 0x145   :  { %v76_v33 = vadd.f32 %v75_v32, %v74_v31 }
 0x147   :  { %v77_v34 = vrot.slane %v76_v33, 1 }
 0x149   :  { %v78_v35 = vadd.f32 %v77_v34, %v76_v33 }
 0x14b   :  { %109 = vpush %v78_v35 }
 0x17c   :  { %s110_s1 = spop %109 }
 0x17d   :  { %v80_v37 = vstv %s110_s1 }
 0x17e   :  { %v81_v38 = vadd.f32 %v80_v37, %v68_v36 }
 0x180   :  { %82 = vst.msk [vmem:[#allocation3] sm:$0x1] %vm31_vm1, %v81_v38 }
 0x187   :  { %v88_v40 = vld [vmem:[#allocation3] sm:$0x1] }
 0x188   :  { %v89_v42 = vmul.f32 0.125, %v88_v40 }
 0x18a   :  { %v90_v43 = vadd.f32 %v89_v42, %v87_v41 }
 0x18c   :  { %91 = vst.msk [vmem:[#allocation7] sm:$0x1] %vm31_vm1, %v90_v43 }
 0x18d   :  { %147 = shalt.err (!%p144_p9)
}
 0x18e   :  { %101 = dma.vmem_to_hbm [thread:$0]  %s99_s21, 16, %s203_s3, [#allocation6]  }
 0x18f   :  { %158 = dma.done.wait [#allocation6], 16  }
 0x190   :  { %159 = vsyncadd [#allocation6], 4294967280 }
 0x191   :  { %105 = vsyncpa [#allocation5], 1 }
 0x192   :  { %106 = vsyncpa [#allocation6], 1 }

</bundles_post_ra>
